<compile_context>
chip_gen: v6e
topology: v6e:2x2x1
jax: 0.10.0
libtpu: 0.0.40
codegen_flags: <defaults>
</compile_context>

<pallas_src>
import functools

import jax
import jax.numpy as jnp
from jax.experimental import pallas as pl
from jax.experimental.pallas import tpu as pltpu


# ---------------------------------------------------------------------------
# Kernel
# ---------------------------------------------------------------------------
def _head_kernel(x_ref, w1_ref, b1_ref, w2_ref, b2_ref, o_ref, *, tanh_bf16):
    # TODO(synk): dropout is treated as inference-mode identity (no RNG masking).
    x = x_ref[...].astype(jnp.bfloat16)                  # no-op if already bf16
    h = jnp.dot(x, w1_ref[...], preferred_element_type=jnp.float32)  # MXU, f32 acc
    h = h + b1_ref[...]                                  # bias add in f32
    if tanh_bf16:
        h = jnp.tanh(h.astype(jnp.bfloat16))             # bf16 EUP (v6e/v7x)
    else:
        h = jnp.tanh(h).astype(jnp.bfloat16)             # f32 EUP (v5e), one cast
    o = jnp.dot(h, w2_ref[...], preferred_element_type=jnp.float32)  # [TB, 128]
    o_ref[...] = (o + b2_ref[...]).astype(o_ref.dtype)


# ---------------------------------------------------------------------------
# Helpers
# ---------------------------------------------------------------------------
def _resident_spec(shape):
    """Constant-index operand: VMEM-resident across grid steps, single buffer."""
    index_map = lambda i: (0,) * len(shape)
    try:
        return pl.BlockSpec(shape, index_map, pipeline_mode=pl.Buffered(1))
    except (AttributeError, TypeError):
        # Older JAX without pipeline_mode: default double-buffering (still correct).
        return pl.BlockSpec(shape, index_map)


def _default_tanh_bf16():
    """bf16 tanh on v6e/v7x (bf16 EUP); f32 tanh on v5e and older."""
    try:
        kind = jax.devices()[0].device_kind.lower()
    except Exception:
        return True
    return not any(v in kind for v in ("v2", "v3", "v4", "v5"))


def prepare_head_params(w_dense, b_dense, w_out, b_out,
                        *, compute_dtype=jnp.bfloat16):
    """One-time parameter layout/dtype prep (hoisted out of the per-call path).

    w_dense: [H, H] ([in, out]); b_dense: [H]; w_out: [H, L]; b_out: [L].
    Returns (w1_bf16, b1_f32, w2_bf16_lane_padded, b2_f32_lane_padded, n_labels).
    """
    H, n_labels = w_out.shape
    n_pad = max(pl.cdiv(n_labels, 128) * 128, 128)   # lane-dense output stores
    w1 = w_dense.astype(compute_dtype)
    w2 = jnp.zeros((H, n_pad), compute_dtype).at[:, :n_labels].set(
        w_out.astype(compute_dtype))
    b1 = b_dense.reshape(1, H).astype(jnp.float32)
    b2 = jnp.zeros((1, n_pad), jnp.float32).at[:, :n_labels].set(
        b_out.reshape(1, n_labels).astype(jnp.float32))
    return w1, b1, w2, b2, n_labels


# ---------------------------------------------------------------------------
# Wrapper
# ---------------------------------------------------------------------------
def roberta_classification_head(features, w1, b1, w2, b2, n_labels,
                                *, block_b=1024, tanh_bf16=None):
    """features: [B, H] (f32 or bf16); params from prepare_head_params."""
    B, H = features.shape
    n_pad = w2.shape[1]
    if tanh_bf16 is None:
        tanh_bf16 = _default_tanh_bf16()

    # Batch tile: multiple of 8 sublanes, capped at block_b, and aimed at
    # >=2 grid steps when the batch allows it (dual-TC sharding on v7x).
    tb = max(8, min(block_b, pl.cdiv(pl.cdiv(B, 2), 8) * 8))
    grid = (pl.cdiv(B, tb),)   # ragged last block handled by Pallas (no jnp.pad)

    out_itemsize = jnp.dtype(features.dtype).itemsize
    cost = pl.CostEstimate(
        flops=2 * B * H * (H + n_pad),
        transcendentals=B * H,
        bytes_accessed=(B * H * out_itemsize
                        + (H * H + H * n_pad) * jnp.dtype(w1.dtype).itemsize
                        + (H + n_pad) * 4
                        + B * n_pad * out_itemsize),
    )

    out = pl.pallas_call(
        functools.partial(_head_kernel, tanh_bf16=tanh_bf16),
        out_shape=jax.ShapeDtypeStruct((B, n_pad), features.dtype),
        grid=grid,
        in_specs=[
            pl.BlockSpec((tb, H), lambda i: (i, 0)),   # features: batch-tiled, dbl-buffered
            _resident_spec((H, H)),                    # dense W (bf16, VMEM-resident)
            _resident_spec((1, H)),                    # dense b (f32)
            _resident_spec((H, n_pad)),                # out_proj W (bf16, lane-padded)
            _resident_spec((1, n_pad)),                # out_proj b (f32, lane-padded)
        ],
        out_specs=pl.BlockSpec((tb, n_pad), lambda i: (i, 0)),
        compiler_params=pltpu.CompilerParams(
            dimension_semantics=("parallel",),         # v7x dual-TC batch sharding
            vmem_limit_bytes=48 * 1024 * 1024,         # safe under v7x's 64 MiB VMEM
        ),
        cost_estimate=cost,
    )(features, w1, b1, w2, b2)

    return out[:, :n_labels]


# ---------------------------------------------------------------------------
# References
# ---------------------------------------------------------------------------
def _reference_f32(features, w_dense, b_dense, w_out, b_out):
    h = jnp.tanh(features @ w_dense + b_dense)
    return h @ w_out + b_out


def _reference_bf16(features, w_dense, b_dense, w_out, b_out, *, tanh_bf16):
    # Mirrors the kernel's bf16-operand / f32-accumulation arithmetic.
    h = jnp.dot(features.astype(jnp.bfloat16), w_dense.astype(jnp.bfloat16),
                preferred_element_type=jnp.float32)
    h = h + b_dense
    if tanh_bf16:
        h = jnp.tanh(h.astype(jnp.bfloat16))
    else:
        h = jnp.tanh(h).astype(jnp.bfloat16)
    o = jnp.dot(h, w_out.astype(jnp.bfloat16), preferred_element_type=jnp.float32)
    return o + b_out


# ---------------------------------------------------------------------------
# Smoke test
# ---------------------------------------------------------------------------
if __name__ == "__main__":
    B, H, NUM_LABELS = 8, 32, 2

    key = jax.random.PRNGKey(0)
    k_x, k_w1, k_b1, k_w2, k_b2 = jax.random.split(key, 5)

    features = jax.random.normal(k_x, (B, H), dtype=jnp.float32)
    # Deterministic parameter init (uniform, roughly matching nn.Linear scale).
    w_dense = jax.random.uniform(k_w1, (H, H), jnp.float32, -1.0, 1.0) / jnp.sqrt(H)
    b_dense = jax.random.uniform(k_b1, (H,), jnp.float32, -1.0, 1.0) / jnp.sqrt(H)
    w_out = jax.random.uniform(k_w2, (H, NUM_LABELS), jnp.float32, -1.0, 1.0) / jnp.sqrt(H)
    b_out = jax.random.uniform(k_b2, (NUM_LABELS,), jnp.float32, -1.0, 1.0) / jnp.sqrt(H)

    # One-time param prep (bf16 cast + out_proj lane padding), then the call.
    params = prepare_head_params(w_dense, b_dense, w_out, b_out)
    out = roberta_classification_head(features, *params)
    out = jax.block_until_ready(out)
    assert out.shape == (B, NUM_LABELS)

    # Tight check vs. a reference using the same bf16-operand arithmetic.
    ref_bf16 = _reference_bf16(features, w_dense, b_dense, w_out, b_out,
                               tanh_bf16=_default_tanh_bf16())
    assert jnp.allclose(out, ref_bf16, atol=2e-3, rtol=2e-3), "mismatch vs bf16 reference"

    # Loose check vs. the full-f32 reference (bf16 MXU operands trade a little
    # precision for 2-4x matmul throughput — acceptable for a classifier head).
    ref_f32 = _reference_f32(features, w_dense, b_dense, w_out, b_out)
    assert jnp.allclose(out, ref_f32, atol=5e-2, rtol=5e-2), "mismatch vs f32 reference"

    print("KERNEL_OK")
</pallas_src>

<mosaic_0001>
module attributes {stable_mosaic.version = 11 : i64} {
  func.func @_head_kernel(%arg0: i32, %arg1: memref<8x32xf32, #tpu.memory_space<vmem>>, %arg2: memref<32x32xbf16, #tpu.memory_space<vmem>>, %arg3: memref<1x32xf32, #tpu.memory_space<vmem>>, %arg4: memref<32x128xbf16, #tpu.memory_space<vmem>>, %arg5: memref<1x128xf32, #tpu.memory_space<vmem>>, %arg6: memref<8x128xf32, #tpu.memory_space<vmem>>) attributes {dimension_semantics = [#tpu.dimension_semantics<parallel>], iteration_bounds = array<i64: 1>, scalar_prefetch = 0 : i64, scratch_operands = 0 : i64, tpu.core_type = #tpu.core_type<tc>, window_params = [{transform_indices = @transform_0, window_bounds = array<i64: 8, 32>}, {pipeline_mode = #tpu.pipeline_mode<synchronous>, transform_indices = @transform_1, window_bounds = array<i64: 32, 32>}, {pipeline_mode = #tpu.pipeline_mode<synchronous>, transform_indices = @transform_2, window_bounds = array<i64: 1, 32>}, {pipeline_mode = #tpu.pipeline_mode<synchronous>, transform_indices = @transform_3, window_bounds = array<i64: 32, 128>}, {pipeline_mode = #tpu.pipeline_mode<synchronous>, transform_indices = @transform_4, window_bounds = array<i64: 1, 128>}, {transform_indices = @transform_5, window_bounds = array<i64: 8, 128>}]} {
    %c0 = arith.constant 0 : index
    %c0_0 = arith.constant 0 : index
    %0 = vector.load %arg1[%c0, %c0_0] : memref<8x32xf32, #tpu.memory_space<vmem>>, vector<8x32xf32>
    %1 = arith.truncf %0 : vector<8x32xf32> to vector<8x32xbf16>
    %c0_1 = arith.constant 0 : index
    %c0_2 = arith.constant 0 : index
    %2 = vector.load %arg2[%c0_1, %c0_2] : memref<32x32xbf16, #tpu.memory_space<vmem>>, vector<32x32xbf16>
    %cst = arith.constant dense<0.000000e+00> : vector<8x32xf32>
    %3 = tpu.matmul %1, %2, %cst {dimension_numbers = #tpu.dot_dimension_numbers<[1], [0], [0], [1], [0, 0, 1, 1], [], []>} : vector<8x32xbf16>, vector<32x32xbf16>, vector<8x32xf32> -> vector<8x32xf32>
    %c0_3 = arith.constant 0 : index
    %c0_4 = arith.constant 0 : index
    %4 = vector.load %arg3[%c0_3, %c0_4] : memref<1x32xf32, #tpu.memory_space<vmem>>, vector<1x32xf32>
    %5 = vector.broadcast %4 : vector<1x32xf32> to vector<8x32xf32>
    %6 = arith.addf %3, %5 : vector<8x32xf32>
    %7 = arith.truncf %6 : vector<8x32xf32> to vector<8x32xbf16>
    %8 = math.tanh %7 : vector<8x32xbf16>
    %c0_5 = arith.constant 0 : index
    %c0_6 = arith.constant 0 : index
    %9 = vector.load %arg4[%c0_5, %c0_6] : memref<32x128xbf16, #tpu.memory_space<vmem>>, vector<32x128xbf16>
    %cst_7 = arith.constant dense<0.000000e+00> : vector<8x128xf32>
    %10 = tpu.matmul %8, %9, %cst_7 {dimension_numbers = #tpu.dot_dimension_numbers<[1], [0], [0], [1], [0, 0, 1, 1], [], []>} : vector<8x32xbf16>, vector<32x128xbf16>, vector<8x128xf32> -> vector<8x128xf32>
    %c0_8 = arith.constant 0 : index
    %c0_9 = arith.constant 0 : index
    %11 = vector.load %arg5[%c0_8, %c0_9] : memref<1x128xf32, #tpu.memory_space<vmem>>, vector<1x128xf32>
    %12 = vector.broadcast %11 : vector<1x128xf32> to vector<8x128xf32>
    %13 = arith.addf %10, %12 : vector<8x128xf32>
    %c0_10 = arith.constant 0 : index
    %c0_11 = arith.constant 0 : index
    %14 = vector.load %arg6[%c0_10, %c0_11] : memref<8x128xf32, #tpu.memory_space<vmem>>, vector<8x128xf32>
    tpu.vector_store %arg6[%c0_10, %c0_11], %13 {strides = array<i32>} : memref<8x128xf32, #tpu.memory_space<vmem>>, vector<8x128xf32>,
    return
  }
  func.func @transform_0(%arg0: i32) -> (i32, i32) {
    %c0_i32 = arith.constant 0 : i32
    %c0_i32_0 = arith.constant 0 : i32
    return %arg0, %c0_i32 : i32, i32
  }
  func.func @transform_1(%arg0: i32) -> (i32, i32) {
    %c0_i32 = arith.constant 0 : i32
    %c0_i32_0 = arith.constant 0 : i32
    %c0_i32_1 = arith.constant 0 : i32
    return %c0_i32, %c0_i32_0 : i32, i32
  }
  func.func @transform_2(%arg0: i32) -> (i32, i32) {
    %c0_i32 = arith.constant 0 : i32
    %c0_i32_0 = arith.constant 0 : i32
    %c0_i32_1 = arith.constant 0 : i32
    return %c0_i32, %c0_i32_0 : i32, i32
  }
  func.func @transform_3(%arg0: i32) -> (i32, i32) {
    %c0_i32 = arith.constant 0 : i32
    %c0_i32_0 = arith.constant 0 : i32
    %c0_i32_1 = arith.constant 0 : i32
    return %c0_i32, %c0_i32_0 : i32, i32
  }
  func.func @transform_4(%arg0: i32) -> (i32, i32) {
    %c0_i32 = arith.constant 0 : i32
    %c0_i32_0 = arith.constant 0 : i32
    %c0_i32_1 = arith.constant 0 : i32
    return %c0_i32, %c0_i32_0 : i32, i32
  }
  func.func @transform_5(%arg0: i32) -> (i32, i32) {
    %c0_i32 = arith.constant 0 : i32
    %c0_i32_0 = arith.constant 0 : i32
    return %arg0, %c0_i32 : i32, i32
  }
}

</mosaic_0001>

<bundles_post_ra>
// kernel: tpu_custom_call.1
= control target key start
LH: loop header
LB: loop body
LE: loop exit
PB: predicated region body
PF: predicated region fallthrough
CT: control target
= control target key end

     0   :  { %10 = vsyncpa [#allocation3], 0  ;;  %s403_s0 = inlined_call_operand.hbm [shape: f32[8,32], index: 0, kind: input, shape index: {}]   ;;  %s404_s1 = inlined_call_operand.hbm [shape: bf16[32,32], index: 1, kind: input, shape index: {}]   ;;  %s405_s2 = inlined_call_operand.vmem [shape: f32[1,32], index: 2, kind: input, shape index: {}]   ;;  %s406_s3 = inlined_call_operand.hbm [shape: bf16[32,128], index: 3, kind: input, shape index: {}]   ;;  %s407_s4 = inlined_call_operand.vmem [shape: f32[1,128], index: 4, kind: input, shape index: {}]   ;;  %s408_s5 = inlined_call_operand.hbm [shape: f32[8,128], index: 5, kind: output, shape index: {}]  }
   0x1   :  { %11 = vsyncpa [#allocation6], 0 }
   0x2   :  { %12 = vsyncpa [#allocation4], 0  ;;  %s345_s18 = smov [#allocation5]  }
   0x3   :  { %s28_s19 = sshll.u32 %s345_s18, 4  ;;  %s29_s19 = int_to_ptr.vmem [resolvable:$true] %s28_s19 }
   0x4   :  { %s267_s20 = scalar_lea.vmem %s29_s19, 256  ;;  %p272_p1 = scmp.lt.s32.totalorder %s29_s19, %s29_s19 }
   0x5   :  { %p268_p0 = scmp.ne.s32.totalorder %s29_s19, %s267_s20  ;;  %p273_p2 = scmp.lt.s32.totalorder %s267_s20, %s267_s20 }
   0x7   :  { %p274_p3 = por %p273_p2, %p272_p1 }
   0x9   :  { %p275_p4 = pnand %p274_p3, %p268_p0 }
   0xb   :  { %278 = shalt.err (!%p275_p4)
}
   0xc   :  { %s346_s21 = smov 64   ;;  %s347_s22 = smov 4  }
   0xd   :  { %34 = dma.hbm_to_vmem [thread:$0]  %s404_s1, 256, %s29_s19, [#allocation6], %s346_s21, %s346_s21, %s347_s22  }
   0xe   :  { %s348_s25 = smov [#allocation2]   ;;  %s349_s27 = smov [#allocation7]  }
   0xf   :  { %s19_s26 = sshll.u32 %s348_s25, 4  ;;  %s42_s28 = sshll.u32 %s349_s27, 4  ;;  %s20_s26 = int_to_ptr.vmem [resolvable:$true] %s19_s26  ;;  %s43_s28 = int_to_ptr.vmem [resolvable:$true] %s42_s28 }
  0x10   :  { %s287_s29 = scalar_lea.vmem %s20_s26, 128  ;;  %p292_p6 = scmp.lt.s32.totalorder %s20_s26, %s20_s26 }
  0x11   :  { %p288_p5 = scmp.ne.s32.totalorder %s20_s26, %s287_s29  ;;  %p293_p7 = scmp.lt.s32.totalorder %s287_s29, %s287_s29 }
  0x13   :  { %p294_p8 = por %p293_p7, %p292_p6 }
  0x15   :  { %p295_p9 = pnand %p294_p8, %p288_p5 }
  0x17   :  { %298 = shalt.err (!%p295_p9)
}
  0x18   :  { %22 = dma.hbm_to_vmem [thread:$0]  %s403_s0, 128, %s20_s26, [#allocation3]  }
  0x19   :  { %s307_s7 = scalar_lea.vmem %s43_s28, 256  ;;  %p312_p11 = scmp.lt.s32.totalorder %s43_s28, %s43_s28 }
  0x1a   :  { %p308_p10 = scmp.ne.s32.totalorder %s43_s28, %s307_s7  ;;  %p313_p12 = scmp.lt.s32.totalorder %s307_s7, %s307_s7 }
  0x1c   :  { %p314_p13 = por %p313_p12, %p312_p11 }
  0x1e   :  { %p315_p0 = pnand %p314_p13, %p308_p10 }
  0x20   :  { %318 = shalt.err (!%p315_p0)
}
  0x21   :  { %48 = dma.hbm_to_vmem [thread:$0]  %s406_s3, 256, %s43_s28, [#allocation6], %s346_s21, %s346_s21, %s347_s22  }
  0x22   :  { %339 = dma.done.wait [#allocation3], 128  }
  0x23   :  { %340 = vsyncadd [#allocation3], 4294967168 }
  0x24   :  { %341 = dma.done.wait [#allocation6], 512  }
  0x25   :  { %342 = vsyncadd [#allocation6], 4294966784  ;;  %v350_v0 = vmov 0.0   ;;  %vm351_vm0 = vmmov 0   ;;  %v253_v1 = vld [vmem:[#allocation5 + $0x8] sm:$0xff]   ;;  %v254_v2 = vld [vmem:[#allocation5] sm:$0xff]  }
  0x26   :  { %229 = vmatprep.subr.bf16.mxu0 %v350_v0  ;;  %233 = vmatprep.mubr.msk.bf16.mxu0 %vm351_vm0, %v350_v0  ;;  %v61_v3 = vld [vmem:[#allocation2] sm:$0xff]  ;;  %vm86_vm1 = vcmask 261120   ;;  %v256_v6 = vld [vmem:[#allocation7] sm:$0xff]   ;;  %s352_s11 = smov [#allocation8]  }
  0x27   :  { %237 = vmatprep.subr.bf16.mxu1 %v350_v0  ;;  %241 = vmatprep.mubr.msk.bf16.mxu1 %vm351_vm0, %v350_v0  ;;  %v62_v4 = vpack.c.bf16 %v61_v3, %v61_v3  ;;  %v255_v5 = vld [vmem:[#allocation7 + $0x8] sm:$0xff]   ;;  %s205_s12 = sshll.u32 %s352_s11, 4  ;;  %s206_s12 = int_to_ptr.vmem [resolvable:$true] %s205_s12 }
  0x28   :  { %230 = vmatpush3.bf16.msra.mxu0 %v253_v1  ;;  %238 = vmatpush3.bf16.msra.mxu1 %v255_v5  ;;  %v215_v7 = vld [vmem:[%s405_s2] ss:$0 sm:$0xff]  ;;  %s319_s2 = scalar_lea.vmem %s206_s12, 128  ;;  %p324_p2 = scmp.lt.s32.totalorder %s206_s12, %s206_s12 }
  0x29   :  { %231 = vmatprep.subr.bf16.mxu0 %v350_v0  ;;  %239 = vmatprep.subr.bf16.mxu1 %v350_v0  ;;  %v219_v15 = vld [vmem:[%s407_s4] ss:$0 sm:$0xff]  ;;  %p320_p1 = scmp.ne.s32.totalorder %s206_s12, %s319_s2  ;;  %p325_p3 = scmp.lt.s32.totalorder %s319_s2, %s319_s2 }
  0x2b   :  { %p326_p4 = por %p325_p3, %p324_p2 }
  0x2c   :  { %232 = vmatpush3.bf16.msra.mxu0 %v254_v2  ;;  %240 = vmatpush3.bf16.msra.mxu1 %v256_v6 }
  0x2d   :  { %p327_p5 = pnand %p326_p4, %p320_p1 }
  0x2f   :  { %234 = vmatmul.mubr.msk.bf16.vlgmr.msra.gmra.mxu0 %vm86_vm1, %v62_v4 }
  0xef   :  { %v124_v8 = vpop.f32.mrf.mxu0 }
  0xf0   :  { %v125_v9 = vadd.f32 %v215_v7, %v124_v8 }
  0xf1   :  { %v235_v10 = vpop.f32.mrf.mxu0 }
  0xf2   :  { %v130_v11 = vpack.c.bf16 %v125_v9, %v125_v9 }
  0xf3   :  { %v127_v12 = vpop.f32.mrf.mxu0 }
  0xf4   :  { %257 = vtanh.bf16 %v130_v11 }
  0xf5   :  { %v236_v13 = vpop.f32.mrf.mxu0 }
 0x102   :  { %v258_v14 = vpop.eup %257 }
 0x103   :  { %242 = vmatmul.mubr.msk.bf16.vlgmr.msra.gmra.mxu1 %vm86_vm1, %v258_v14 }
 0x1c3   :  { %v192_v16 = vpop.f32.mrf.mxu1 }
 0x1c4   :  { %v193_v17 = vadd.f32 %v219_v15, %v192_v16 }
 0x1c5   :  { %v243_v18 = vpop.f32.mrf.mxu1 }
 0x1c6   :  { %198 = vst [vmem:[#allocation8] sm:$0xff] %v193_v17 }
 0x1c7   :  { %v195_v19 = vpop.f32.mrf.mxu1 }
 0x1c8   :  { %330 = shalt.err (!%p327_p5)
}
 0x1c9   :  { %208 = dma.vmem_to_hbm [thread:$0]  %s206_s12, 128, %s408_s5, [#allocation4]   ;;  %v244_v20 = vpop.f32.mrf.mxu1 }
 0x1ca   :  { %343 = dma.done.wait [#allocation4], 128  }
 0x1cb   :  { %344 = vsyncadd [#allocation4], 4294967168 }
 0x1cc   :  { %212 = vsyncpa [#allocation3], 1 }
 0x1cd   :  { %213 = vsyncpa [#allocation6], 1 }
 0x1ce   :  { %214 = vsyncpa [#allocation4], 1 }

</bundles_post_ra>
